<compile_context>
chip_gen: v5e
topology: v5e:2x2
jax: 0.10.0
libtpu: 0.0.40
codegen_flags: <defaults>
</compile_context>

<pallas_src>
import functools

import jax
import jax.numpy as jnp
from jax.experimental import pallas as pl
from jax.experimental.pallas import tpu as pltpu


# ---------------------------------------------------------------------------
# Kernels
# ---------------------------------------------------------------------------
def _linear_kernel(x_ref, w_ref, b_ref, o_ref):
    # x_ref: (TM, D)  w_ref: (TN, D)  (PyTorch nn.Linear layout)  b_ref: (1, TN)
    # Native-dtype MXU inputs, f32 accumulation via preferred_element_type.
    y = jax.lax.dot_general(
        x_ref[...], w_ref[...],
        dimension_numbers=(((1,), (1,)), ((), ())),
        preferred_element_type=jnp.float32)
    o_ref[...] = (y + b_ref[...].astype(jnp.float32)).astype(o_ref.dtype)


def _linear_kernel_ktiled(x_ref, w_ref, b_ref, o_ref, acc_ref):
    # Same matmul, but the contraction dim is tiled on the innermost
    # ("arbitrary") grid axis with an f32 VMEM accumulator.
    k = pl.program_id(2)

    @pl.when(k == 0)
    def _init():
        acc_ref[...] = jnp.zeros_like(acc_ref)

    acc_ref[...] += jax.lax.dot_general(
        x_ref[...], w_ref[...],
        dimension_numbers=(((1,), (1,)), ((), ())),
        preferred_element_type=jnp.float32)

    @pl.when(k == pl.num_programs(2) - 1)
    def _finalize():
        o_ref[...] = (acc_ref[...] + b_ref[...].astype(jnp.float32)).astype(o_ref.dtype)


# ---------------------------------------------------------------------------
# Tile selection (generation-aware)
# ---------------------------------------------------------------------------
def _vmem_capacity_bytes():
    try:
        info = pltpu.get_tpu_info()
        cap = getattr(info, "vmem_capacity_bytes", None)
        if cap:
            return int(cap)
    except Exception:
        pass
    return 64 * 1024 * 1024  # conservative fallback = v7x per-TensorCore VMEM


def _footprint_bytes(row, col, k, num_k, xi, wi, bi, oi):
    f = (2 * row * k * xi          # x block, double-buffered
         + 2 * col * k * wi        # weight block, double-buffered
         + 2 * col * bi            # bias block, double-buffered
         + 2 * row * col * oi)     # output block, double-buffered
    if num_k > 1:
        f += row * col * 4         # f32 accumulator scratch
    return f


def _choose_tiles(N, D, O, xi, wi, bi, oi, budget):
    # Big blocks amortize the ~0.35 us/step overhead; single row block for
    # small N (no pointless split on single-TensorCore chips).
    row = N if N <= 512 else 512
    col = O if O <= 512 else 512
    k = D
    k_cands = [c for c in (4096, 2048, 1536, 1024, 768, 512, 384, 256, 128)
               if c < D and D % c == 0]
    for _ in range(32):
        if _footprint_bytes(row, col, k, pl.cdiv(D, k), xi, wi, bi, oi) <= budget:
            break
        if k_cands:
            k = k_cands.pop(0)         # K-tile first: keeps MXU M/N dims dense
        elif col > 128:
            col = max(128, col // 2)
        elif row > 64:
            row = max(64, row // 2)
        else:
            break
    return row, col, k


# ---------------------------------------------------------------------------
# Wrapper
# ---------------------------------------------------------------------------
def token_classifier(z, weight, bias, *, row_tile=None, col_tile=None,
                     k_tile=None, rows_outer=None):
    """TokenClassifier forward: z @ weight.T + bias.

    z:      (..., classify_dim)
    weight: (out_dim, classify_dim)  -- PyTorch nn.Linear layout, used as-is
    bias:   (out_dim,)
    """
    *lead, D = z.shape
    O, Dw = weight.shape
    assert Dw == D, f"weight dim mismatch: {weight.shape} vs feature dim {D}"
    assert bias.shape == (O,)

    N = 1
    for d in lead:
        N *= d
    x = z.reshape(N, D)
    b2 = bias.reshape(1, O)

    xi, wi, bi = x.dtype.itemsize, weight.dtype.itemsize, bias.dtype.itemsize
    oi = xi

    cap = _vmem_capacity_bytes()
    budget = int(0.75 * cap)

    r_def, c_def, k_def = _choose_tiles(N, D, O, xi, wi, bi, oi, budget)
    row_tile = r_def if row_tile is None else row_tile
    col_tile = c_def if col_tile is None else col_tile
    k_tile = k_def if k_tile is None else k_tile
    assert D % k_tile == 0, "contraction tile must divide classify_dim"

    num_i = pl.cdiv(N, row_tile)   # row blocks (boundary block is store-masked)
    num_j = pl.cdiv(O, col_tile)   # col blocks (boundary block is store-masked)
    num_k = D // k_tile

    # Grid-axis order: re-stream the cheaper operand, stream the bigger one once.
    if rows_outer is None:
        w_restream = O * D * wi * (num_i - 1)   # rows-outer: W refetched per row block
        x_restream = N * D * xi * (num_j - 1)   # cols-outer: x refetched per col block
        rows_outer = w_restream <= x_restream

    if num_k == 1:
        kernel = _linear_kernel
        scratch = []
        dims = ("parallel", "parallel")
        if rows_outer:
            grid = (num_i, num_j)
            x_map = lambda i, j: (i, 0)
            w_map = lambda i, j: (j, 0)
            b_map = lambda i, j: (0, j)
            o_map = lambda i, j: (i, j)
        else:
            grid = (num_j, num_i)
            x_map = lambda j, i: (i, 0)
            w_map = lambda j, i: (j, 0)
            b_map = lambda j, i: (0, j)
            o_map = lambda j, i: (i, j)
    else:
        kernel = _linear_kernel_ktiled
        scratch = [pltpu.VMEM((row_tile, col_tile), jnp.float32)]
        dims = ("parallel", "parallel", "arbitrary")
        if rows_outer:
            grid = (num_i, num_j, num_k)
            x_map = lambda i, j, k: (i, k)
            w_map = lambda i, j, k: (j, k)
            b_map = lambda i, j, k: (0, j)
            o_map = lambda i, j, k: (i, j)
        else:
            grid = (num_j, num_i, num_k)
            x_map = lambda j, i, k: (i, k)
            w_map = lambda j, i, k: (j, k)
            b_map = lambda j, i, k: (0, j)
            o_map = lambda j, i, k: (i, j)

    footprint = _footprint_bytes(row_tile, col_tile, k_tile, num_k, xi, wi, bi, oi)
    vmem_limit = int(min(max(2 * footprint, 32 * 1024 * 1024), int(0.9 * cap)))

    # HBM traffic model that accounts for the re-streamed operand.
    if num_k == 1:
        x_passes = 1 if rows_outer else num_j
        w_passes = num_i if rows_outer else 1
    else:
        x_passes, w_passes = num_j, num_i
    cost = pl.CostEstimate(
        flops=2 * N * D * O,
        transcendentals=0,
        bytes_accessed=(N * D * xi * x_passes + O * D * wi * w_passes
                        + O * bi + N * O * oi),
    )

    out = pl.pallas_call(
        kernel,
        out_shape=jax.ShapeDtypeStruct((N, O), z.dtype),
        grid_spec=pltpu.PrefetchScalarGridSpec(
            num_scalar_prefetch=0,
            grid=grid,
            in_specs=[
                pl.BlockSpec((row_tile, k_tile), x_map),   # activations (N, D)
                pl.BlockSpec((col_tile, k_tile), w_map),   # weight (O, D), native layout
                pl.BlockSpec((1, col_tile), b_map),        # bias (1, O)
            ],
            out_specs=pl.BlockSpec((row_tile, col_tile), o_map),
            scratch_shapes=scratch,
        ),
        compiler_params=pltpu.CompilerParams(
            dimension_semantics=dims,
            vmem_limit_bytes=vmem_limit,
        ),
        cost_estimate=cost,
    )(x, weight, b2)

    return out.reshape(*lead, O)


def reference(z, weight, bias):
    return (
        jnp.einsum("...d,od->...o", z, weight,
                   precision=jax.lax.Precision.HIGHEST)
        + bias
    )


if __name__ == "__main__":
    key = jax.random.PRNGKey(0)

    # --- Test 1: module-consistent small shapes (default tiling, single block).
    B, S, classify_dim, out_dim = 2, 8, 32, 16
    k_z, k_w, k_b = jax.random.split(key, 3)
    z = jax.random.normal(k_z, (B, S, classify_dim), dtype=jnp.float32)
    weight = jax.random.normal(k_w, (out_dim, classify_dim), dtype=jnp.float32) * 0.05
    bias = jax.random.normal(k_b, (out_dim,), dtype=jnp.float32) * 0.05

    out = jax.block_until_ready(jax.jit(token_classifier)(z, weight, bias))
    ref = reference(z, weight, bias)
    assert out.shape == (B, S, out_dim)
    assert jnp.allclose(out, ref, atol=2e-3, rtol=2e-3), "mismatch vs reference (test 1)"

    # --- Test 2: forced K-tiling + cols-outer order + ragged row/col boundaries.
    B2, S2, D2, O2 = 3, 67, 256, 320            # N = 201 rows
    k_z, k_w, k_b = jax.random.split(jax.random.PRNGKey(0), 3)
    z2 = jax.random.normal(k_z, (B2, S2, D2), dtype=jnp.float32)
    w2 = jax.random.normal(k_w, (O2, D2), dtype=jnp.float32) * 0.05
    b2 = jax.random.normal(k_b, (O2,), dtype=jnp.float32) * 0.05
    run2 = jax.jit(functools.partial(token_classifier, row_tile=64, col_tile=128,
                                     k_tile=128, rows_outer=False))
    out2 = jax.block_until_ready(run2(z2, w2, b2))
    ref2 = reference(z2, w2, b2)
    assert out2.shape == (B2, S2, O2)
    assert jnp.allclose(out2, ref2, atol=2e-2, rtol=2e-2), "mismatch vs reference (test 2)"

    # --- Test 3: default heuristics with a row-boundary block (N not a tile multiple).
    B3, S3, D3, O3 = 5, 120, 64, 192            # N = 600 rows
    k_z, k_w, k_b = jax.random.split(jax.random.PRNGKey(0), 3)
    z3 = jax.random.normal(k_z, (B3, S3, D3), dtype=jnp.float32)
    w3 = jax.random.normal(k_w, (O3, D3), dtype=jnp.float32) * 0.05
    b3 = jax.random.normal(k_b, (O3,), dtype=jnp.float32) * 0.05
    out3 = jax.block_until_ready(jax.jit(token_classifier)(z3, w3, b3))
    ref3 = reference(z3, w3, b3)
    assert out3.shape == (B3, S3, O3)
    assert jnp.allclose(out3, ref3, atol=2e-2, rtol=2e-2), "mismatch vs reference (test 3)"

    print("KERNEL_OK")
</pallas_src>

<mosaic_0001>
module attributes {stable_mosaic.version = 11 : i64} {
  func.func @_linear_kernel(%arg0: i32, %arg1: i32, %arg2: memref<16x32xf32, #tpu.memory_space<vmem>>, %arg3: memref<16x32xf32, #tpu.memory_space<vmem>>, %arg4: memref<1x16xf32, #tpu.memory_space<vmem>>, %arg5: memref<16x16xf32, #tpu.memory_space<vmem>>) attributes {dimension_semantics = [#tpu.dimension_semantics<parallel>, #tpu.dimension_semantics<parallel>], iteration_bounds = array<i64: 1, 1>, scalar_prefetch = 0 : i64, scratch_operands = 0 : i64, tpu.core_type = #tpu.core_type<tc>, window_params = [{transform_indices = @transform_0, window_bounds = array<i64: 16, 32>}, {transform_indices = @transform_1, window_bounds = array<i64: 16, 32>}, {transform_indices = @transform_2, window_bounds = array<i64: 1, 16>}, {transform_indices = @transform_3, window_bounds = array<i64: 16, 16>}]} {
    %c0 = arith.constant 0 : index
    %c0_0 = arith.constant 0 : index
    %0 = vector.load %arg2[%c0, %c0_0] : memref<16x32xf32, #tpu.memory_space<vmem>>, vector<16x32xf32>
    %c0_1 = arith.constant 0 : index
    %c0_2 = arith.constant 0 : index
    %1 = vector.load %arg3[%c0_1, %c0_2] : memref<16x32xf32, #tpu.memory_space<vmem>>, vector<16x32xf32>
    %cst = arith.constant dense<0.000000e+00> : vector<16x16xf32>
    %2 = tpu.matmul %0, %1, %cst {dimension_numbers = #tpu.dot_dimension_numbers<[1], [1], [0], [0], [0, 0, 1, 0], [], []>} : vector<16x32xf32>, vector<16x32xf32>, vector<16x16xf32> -> vector<16x16xf32>
    %c0_3 = arith.constant 0 : index
    %c0_4 = arith.constant 0 : index
    %3 = vector.load %arg4[%c0_3, %c0_4] : memref<1x16xf32, #tpu.memory_space<vmem>>, vector<1x16xf32>
    %4 = vector.broadcast %3 : vector<1x16xf32> to vector<16x16xf32>
    %5 = arith.addf %2, %4 : vector<16x16xf32>
    %c0_5 = arith.constant 0 : index
    %c0_6 = arith.constant 0 : index
    %6 = vector.load %arg5[%c0_5, %c0_6] : memref<16x16xf32, #tpu.memory_space<vmem>>, vector<16x16xf32>
    tpu.vector_store %arg5[%c0_5, %c0_6], %5 {strides = array<i32>} : memref<16x16xf32, #tpu.memory_space<vmem>>, vector<16x16xf32>,
    return
  }
  func.func @transform_0(%arg0: i32, %arg1: i32) -> (i32, i32) {
    %c0_i32 = arith.constant 0 : i32
    %c0_i32_0 = arith.constant 0 : i32
    return %arg0, %c0_i32 : i32, i32
  }
  func.func @transform_1(%arg0: i32, %arg1: i32) -> (i32, i32) {
    %c0_i32 = arith.constant 0 : i32
    %c0_i32_0 = arith.constant 0 : i32
    return %arg1, %c0_i32 : i32, i32
  }
  func.func @transform_2(%arg0: i32, %arg1: i32) -> (i32, i32) {
    %c0_i32 = arith.constant 0 : i32
    %c0_i32_0 = arith.constant 0 : i32
    return %c0_i32, %arg1 : i32, i32
  }
  func.func @transform_3(%arg0: i32, %arg1: i32) -> (i32, i32) {
    %c0_i32 = arith.constant 0 : i32
    return %arg0, %arg1 : i32, i32
  }
}

</mosaic_0001>

<bundles_post_ra>
// kernel: token_classifier.1
= control target key start
LH: loop header
LB: loop body
LE: loop exit
PB: predicated region body
PF: predicated region fallthrough
CT: control target
= control target key end

     0   :  { %8 = vsyncpa [#allocation3], 0  ;;  %s250_s0 = inlined_call_operand.hbm [shape: f32[16,32], index: 0, kind: input, shape index: {}]   ;;  %s251_s1 = inlined_call_operand.hbm [shape: f32[16,32], index: 1, kind: input, shape index: {}]   ;;  %s252_s2 = inlined_call_operand.vmem [shape: f32[1,16], index: 2, kind: input, shape index: {}]   ;;  %s253_s3 = inlined_call_operand.hbm [shape: f32[16,16], index: 3, kind: output, shape index: {}]  }
   0x1   :  { %9 = vsyncpa [#allocation6], 0 }
   0x2   :  { %10 = vsyncpa [#allocation4], 0  ;;  %s15_s14 = sshll.u32 %s250_s0, 4  ;;  %s204_s15 = smov [#allocation2]   ;;  %s16_s14 = int_to_ptr.hbm [resolvable:$true] %s15_s14 }
   0x3   :  { %s17_s16 = sshll.u32 %s204_s15, 4  ;;  %s28_s19 = sshll.u32 %s251_s1, 4  ;;  %s18_s16 = int_to_ptr.vmem [resolvable:$true] %s17_s16  ;;  %s29_s19 = int_to_ptr.hbm [resolvable:$true] %s28_s19 }
   0x4   :  { %s205_s20 = smov 128   ;;  %s206_s21 = smov 8  }
   0x5   :  { %23 = dma.hbm_to_vmem [thread:$0]  %s16_s14, 256, %s18_s16, [#allocation3], %s205_s20, %s205_s20, %s206_s21  }
   0x6   :  { %s207_s22 = smov [#allocation5]  }
   0x7   :  { %s30_s23 = sshll.u32 %s207_s22, 4  ;;  %s31_s23 = int_to_ptr.vmem [resolvable:$true] %s30_s23 }
   0x8   :  { %36 = dma.hbm_to_vmem [thread:$0]  %s29_s19, 256, %s31_s23, [#allocation6], %s205_s20, %s205_s20, %s206_s21  }
   0x9   :  { %198 = dma.done.wait [#allocation3], 256  }
   0xa   :  { %199 = vsyncadd [#allocation3], 4294967040 }
   0xb   :  { %200 = dma.done.wait [#allocation6], 256  }
   0xc   :  { %201 = vsyncadd [#allocation6], 4294967040  ;;  %vm55_vm0 = vcmask 261120   ;;  %v50_v0 = vld [vmem:[#allocation5 + $0x8] sm:$0xff]  ;;  %v49_v1 = vld [vmem:[#allocation5] sm:$0xff]  ;;  %s208_s24 = smov [#allocation7]  }
   0xd   :  { %114 = vmatpush.xpose.msk.msra.mxu0 %vm55_vm0, %v50_v0  ;;  %118 = vmatpush.xpose.msk.msra.mxu1 %vm55_vm0, %v50_v0  ;;  %v47_v2 = vld [vmem:[#allocation2] sm:$0xff]  ;;  %v48_v3 = vld [vmem:[#allocation2 + $0x8] sm:$0xff]  ;;  %s98_s25 = sshll.u32 %s208_s24, 4  ;;  %s100_s28 = sshll.u32 %s253_s3, 4  ;;  %vm91_vm1 = vcmask 130048   ;;  %s99_s25 = int_to_ptr.vmem [resolvable:$true] %s98_s25  ;;  %s101_s28 = int_to_ptr.hbm [resolvable:$true] %s100_s28 }
   0xe   :  { %v125_v4 = vld [vmem:[%s252_s2] ss:$0 sm:$0xff] }
  0x11   :  { %115 = vmatpush.xpose.msk.msra.mxu0 %vm55_vm0, %v49_v1  ;;  %119 = vmatpush.xpose.msk.msra.mxu1 %vm55_vm0, %v49_v1 }
  0x14   :  { %116 = vmatmul.msk.f32.vlgmr.msra.gmra.mxu0 %vm55_vm0, %v47_v2  ;;  %117 = vmatmul.msk.f32.vlgmr.msra.gmra.mxu1 %vm55_vm0, %v48_v3 }
  0x91   :  { %v85_v5 = vpop.f32.mrf.mxu0  ;;  %v88_v6 = vpop.f32.mrf.mxu1 }
  0x92   :  { %v86_v7 = vadd.f32 %v125_v4, %v85_v5  ;;  %v89_v8 = vadd.f32 %v125_v4, %v88_v6 }
  0x94   :  { %92 = vst.msk [vmem:[#allocation7] sm:$0xff] %vm91_vm1, %v86_v7 }
  0x95   :  { %93 = vst.msk [vmem:[#allocation7 + $0x8] sm:$0xff] %vm91_vm1, %v89_v8 }
  0x96   :  { %106 = dma.vmem_to_hbm [thread:$0]  %s99_s25, 256, %s101_s28, [#allocation4], %s205_s20, %s205_s20, %s206_s21  }
  0x97   :  { %202 = dma.done.wait [#allocation4], 256  }
  0x98   :  { %203 = vsyncadd [#allocation4], 4294967040 }
  0x99   :  { %111 = vsyncpa [#allocation3], 1 }
  0x9a   :  { %112 = vsyncpa [#allocation6], 1 }
  0x9b   :  { %113 = vsyncpa [#allocation4], 1 }

</bundles_post_ra>
